<compile_context>
chip_gen: v7x
topology: tpu7x:2x2x1
jax: 0.10.0
libtpu: 0.0.40
codegen_flags: <defaults>
</compile_context>

<pallas_src>
import jax
import jax.numpy as jnp
from jax.experimental import pallas as pl
from jax.experimental.pallas import tpu as pltpu

N = 4            # demo batch
L = 19           # input sequence length (1 channel)
LC = L + 1       # conv output length (padding=1, kernel=2) -> 20
LP = LC // 2     # pooled length -> 10
FEAT = 5 * LP    # flattened feature width -> 50
PADW = 128       # lane-dense padded width for all in-kernel matmuls and I/O


def _round_up(a, b):
    return (a + b - 1) // b * b


def _elu(v):
    """F.elu (alpha=1) for the kernel.

    Negative branch is expm1(v), computed with a cubic Taylor fallback for
    |v| <= 1e-2 so accuracy matches expm1 without depending on an expm1
    lowering rule.  Exactly zero at v == 0 (keeps padded lanes zero).
    """
    vn = jnp.minimum(v, 0.0)
    taylor = vn * (1.0 + 0.5 * vn * (1.0 + vn * (1.0 / 3.0)))
    em1 = jnp.where(vn > -1e-2, taylor, jnp.exp(vn) - 1.0)
    return jnp.where(v > 0, v, em1)


def conv1d_net_kernel(x_ref, p_ref, w_ref, out_ref):
    """One batch tile: conv(+BN)+ELU+maxpool (as two matmuls) + the 3 FC layers.

    x_ref  : (bn, 128)     lanes 0:10 = x_pad[2p], 10:20 = x_pad[2p+1],
                           20:30 = x_pad[2p+2], rest zero.
    p_ref  : (4, 128)      row 0: folded conv+BN bias (channel-major, 50 wide);
                           rows 1..3: fc1/fc2/fc3 biases (zero padded).
    w_ref  : (5, 128, 128) [0]/[1]: even/odd conv->view(-1,50) matrices;
                           [2]/[3]/[4]: fc1^T / fc2^T / fc3^T (zero padded).
    out_ref: (bn, 128)     logits in lanes 0:3, zeros elsewhere.
    """
    x = x_ref[...]
    p = p_ref[...]
    f32 = jnp.float32

    bconv = p[0:1, :]
    even = _elu(jnp.dot(x, w_ref[0], preferred_element_type=f32) + bconv)
    odd = _elu(jnp.dot(x, w_ref[1], preferred_element_type=f32) + bconv)
    feat = jnp.maximum(even, odd)    # MaxPool1d(2); lanes 0:50 == .view(-1, 50)

    h1 = _elu(jnp.dot(feat, w_ref[2], preferred_element_type=f32) + p[1:2, :])
    # drop_4: identity (eval mode)
    h2 = _elu(jnp.dot(h1, w_ref[3], preferred_element_type=f32) + p[2:3, :])
    # drop_3: identity (eval mode)
    out_ref[...] = jnp.dot(h2, w_ref[4], preferred_element_type=f32) + p[3:4, :]


def conv1d_net_forward(x, params, *, block_n=256):
    """x: (N, 1, L) float32.  Returns (N, 3) float32 (eval-mode forward)."""
    n = x.shape[0]
    bn = _round_up(min(block_n, _round_up(n, 8)), 8)
    n_pad = _round_up(n, bn)

    # --- activations: even/odd strided taps of the zero-padded signal, packed
    #     into one lane-dense (n_pad, 128) slab (single DMA per batch tile). ---
    xp = jnp.pad(x[:, 0, :], ((0, 0), (1, 1)))                   # (n, L+2)
    a = xp[:, 0:2 * LP:2]            # x_pad[2p]
    b = xp[:, 1:2 * LP + 1:2]        # x_pad[2p+1]
    c = xp[:, 2:2 * LP + 2:2]        # x_pad[2p+2]
    x_in = jnp.zeros((n_pad, PADW), jnp.float32)
    x_in = x_in.at[:n, 0 * LP:1 * LP].set(a)
    x_in = x_in.at[:n, 1 * LP:2 * LP].set(b)
    x_in = x_in.at[:n, 2 * LP:3 * LP].set(c)

    # --- fold BatchNorm1d (eval mode, running stats) into conv weight/bias ---
    s = params["bn_gamma"] / jnp.sqrt(params["bn_var"] + params["bn_eps"])
    w_eff = params["conv_w"] * s[:, None]                                    # (5, 2)
    b_eff = (params["conv_b"] - params["bn_mean"]) * s + params["bn_beta"]   # (5,)

    # Conv expressed as matmul: taps @ M lands directly in the channel-major
    # flattened layout (col = c*10 + p), matching PyTorch's .view(-1, 50).
    eye = jnp.eye(LP, dtype=jnp.float32)
    k0 = jnp.kron(w_eff[:, 0][None, :], eye)     # (10, 50): tap-0 weight per channel
    k1 = jnp.kron(w_eff[:, 1][None, :], eye)     # (10, 50): tap-1 weight per channel

    wslab = jnp.zeros((5, PADW, PADW), jnp.float32)
    wslab = wslab.at[0, 0 * LP:1 * LP, :FEAT].set(k0)    # even: w0 * x_pad[2p]
    wslab = wslab.at[0, 1 * LP:2 * LP, :FEAT].set(k1)    #       w1 * x_pad[2p+1]
    wslab = wslab.at[1, 1 * LP:2 * LP, :FEAT].set(k0)    # odd:  w0 * x_pad[2p+1]
    wslab = wslab.at[1, 2 * LP:3 * LP, :FEAT].set(k1)    #       w1 * x_pad[2p+2]
    wslab = wslab.at[2, :FEAT, :24].set(params["fc1_w"].T)
    wslab = wslab.at[3, :24, :8].set(params["fc2_w"].T)
    wslab = wslab.at[4, :8, :3].set(params["fc3_w"].T)

    pslab = jnp.zeros((4, PADW), jnp.float32)
    pslab = pslab.at[0, :FEAT].set(jnp.repeat(b_eff, LP))   # conv+BN bias, chan-major
    pslab = pslab.at[1, :24].set(params["fc1_b"])
    pslab = pslab.at[2, :8].set(params["fc2_b"])
    pslab = pslab.at[3, :3].set(params["fc3_b"])

    grid_spec = pltpu.PrefetchScalarGridSpec(
        num_scalar_prefetch=0,
        grid=(n_pad // bn,),
        in_specs=[
            pl.BlockSpec((bn, PADW), lambda i: (i, 0)),          # activations: tiled
            pl.BlockSpec((4, PADW), lambda i: (0, 0)),           # biases: resident
            pl.BlockSpec((5, PADW, PADW), lambda i: (0, 0, 0)),  # weights: resident
        ],
        out_specs=pl.BlockSpec((bn, PADW), lambda i: (i, 0)),
    )

    cost = pl.CostEstimate(
        flops=2 * n_pad * 5 * PADW * PADW,
        transcendentals=n_pad * (2 * FEAT + 24 + 8),
        bytes_accessed=4 * (2 * n_pad * PADW + 4 * PADW + 5 * PADW * PADW),
    )

    out = pl.pallas_call(
        conv1d_net_kernel,
        out_shape=jax.ShapeDtypeStruct((n_pad, PADW), jnp.float32),
        grid_spec=grid_spec,
        compiler_params=pltpu.CompilerParams(
            dimension_semantics=("parallel",)),   # lets v7x shard batch tiles on 2 TCs
        cost_estimate=cost,
    )(x_in, pslab, wslab)

    return out[:n, :3]


# ----------------------------- reference & test ------------------------------

def _elu_ref(v):
    return jnp.where(v > 0, v, jnp.expm1(jnp.minimum(v, 0.0)))


def reference_forward(x, params):
    """Pure-JAX reference mirroring the PyTorch eval-mode forward."""
    w, b = params["conv_w"], params["conv_b"]
    xp = jnp.pad(x[:, 0, :], ((0, 0), (1, 1)))                       # (N, L+2)
    conv = (xp[:, None, 0:LC] * w[None, :, 0:1]
            + xp[:, None, 1:LC + 1] * w[None, :, 1:2]) + b[None, :, None]
    s = params["bn_gamma"] / jnp.sqrt(params["bn_var"] + params["bn_eps"])
    conv = (conv - params["bn_mean"][None, :, None]) * s[None, :, None] \
        + params["bn_beta"][None, :, None]
    a = _elu_ref(conv)
    a = a[:, :, :LP * 2].reshape(x.shape[0], 5, LP, 2).max(-1)
    feat = a.reshape(x.shape[0], FEAT)
    h1 = _elu_ref(feat @ params["fc1_w"].T + params["fc1_b"])
    h2 = _elu_ref(h1 @ params["fc2_w"].T + params["fc2_b"])
    return h2 @ params["fc3_w"].T + params["fc3_b"]


def init_params(key):
    ks = jax.random.split(key, 8)

    def u(k, shape, bound):
        return jax.random.uniform(k, shape, jnp.float32, -bound, bound)

    kc = (1.0 / (1 * 2)) ** 0.5
    k1 = (1.0 / 50) ** 0.5
    k2 = (1.0 / 24) ** 0.5
    k3 = (1.0 / 8) ** 0.5
    return {
        "conv_w": u(ks[0], (5, 2), kc),          # Conv1d(1, 5, 2) weight (in-ch squeezed)
        "conv_b": u(ks[1], (5,), kc),
        "bn_gamma": jnp.ones((5,), jnp.float32),
        "bn_beta": jnp.zeros((5,), jnp.float32),
        "bn_mean": jnp.zeros((5,), jnp.float32),
        "bn_var": jnp.ones((5,), jnp.float32),
        "bn_eps": jnp.float32(1e-5),
        "fc1_w": u(ks[2], (24, 50), k1),
        "fc1_b": u(ks[3], (24,), k1),
        "fc2_w": u(ks[4], (8, 24), k2),
        "fc2_b": u(ks[5], (8,), k2),
        "fc3_w": u(ks[6], (3, 8), k3),
        "fc3_b": u(ks[7], (3,), k3),
    }


if __name__ == "__main__":
    key = jax.random.PRNGKey(0)
    kp, kx = jax.random.split(key)
    params = init_params(kp)
    x = jax.random.normal(kx, (N, 1, L), jnp.float32)   # NCL, 1 input channel

    out = jax.block_until_ready(conv1d_net_forward(x, params))
    ref = reference_forward(x, params)

    assert out.shape == (N, 3)
    assert jnp.allclose(out, ref, atol=1e-5, rtol=1e-5), (out, ref)
    print("KERNEL_OK")
</pallas_src>

<mosaic_0001>
module attributes {stable_mosaic.version = 11 : i64} {
  func.func @conv1d_net_kernel(%arg0: i32, %arg1: memref<8x128xf32, #tpu.memory_space<vmem>>, %arg2: memref<4x128xf32, #tpu.memory_space<vmem>>, %arg3: memref<5x128x128xf32, #tpu.memory_space<vmem>>, %arg4: memref<8x128xf32, #tpu.memory_space<vmem>>) attributes {dimension_semantics = [#tpu.dimension_semantics<parallel>], iteration_bounds = array<i64: 1>, scalar_prefetch = 0 : i64, scratch_operands = 0 : i64, tpu.core_type = #tpu.core_type<tc>, window_params = [{transform_indices = @transform_0, window_bounds = array<i64: 8, 128>}, {pipeline_mode = #tpu.pipeline_mode<synchronous>, transform_indices = @transform_1, window_bounds = array<i64: 4, 128>}, {pipeline_mode = #tpu.pipeline_mode<synchronous>, transform_indices = @transform_2, window_bounds = array<i64: 5, 128, 128>}, {transform_indices = @transform_3, window_bounds = array<i64: 8, 128>}]} {
    %c0 = arith.constant 0 : index
    %c0_0 = arith.constant 0 : index
    %0 = vector.load %arg1[%c0, %c0_0] : memref<8x128xf32, #tpu.memory_space<vmem>>, vector<8x128xf32>
    %c0_1 = arith.constant 0 : index
    %c0_2 = arith.constant 0 : index
    %1 = vector.load %arg2[%c0_1, %c0_2] : memref<4x128xf32, #tpu.memory_space<vmem>>, vector<4x128xf32>
    %2 = vector.extract_strided_slice %1 {offsets = [0, 0], sizes = [1, 128], strides = [1, 1]} : vector<4x128xf32> to vector<1x128xf32>
    %c0_3 = arith.constant 0 : index
    %c0_4 = arith.constant 0 : index
    %c0_5 = arith.constant 0 : index
    %3 = vector.load %arg3[%c0_3, %c0_4, %c0_5] : memref<5x128x128xf32, #tpu.memory_space<vmem>>, vector<1x128x128xf32>
    %4 = vector.shape_cast %3 : vector<1x128x128xf32> to vector<128x128xf32>
    %cst = arith.constant dense<0.000000e+00> : vector<8x128xf32>
    %5 = tpu.matmul %0, %4, %cst {dimension_numbers = #tpu.dot_dimension_numbers<[1], [0], [0], [1], [0, 0, 1, 1], [], []>} : vector<8x128xf32>, vector<128x128xf32>, vector<8x128xf32> -> vector<8x128xf32>
    %6 = vector.broadcast %2 : vector<1x128xf32> to vector<8x128xf32>
    %7 = arith.addf %5, %6 : vector<8x128xf32>
    %cst_6 = arith.constant 0.000000e+00 : f32
    %8 = vector.broadcast %cst_6 : f32 to vector<8x128xf32>
    %9 = arith.minimumf %7, %8 : vector<8x128xf32>
    %cst_7 = arith.constant 5.000000e-01 : f32
    %10 = vector.broadcast %cst_7 : f32 to vector<8x128xf32>
    %11 = arith.mulf %10, %9 : vector<8x128xf32>
    %cst_8 = arith.constant 0.333333343 : f32
    %12 = vector.broadcast %cst_8 : f32 to vector<8x128xf32>
    %13 = arith.mulf %9, %12 : vector<8x128xf32>
    %cst_9 = arith.constant 1.000000e+00 : f32
    %14 = vector.broadcast %cst_9 : f32 to vector<8x128xf32>
    %15 = arith.addf %14, %13 : vector<8x128xf32>
    %16 = arith.mulf %11, %15 : vector<8x128xf32>
    %cst_10 = arith.constant 1.000000e+00 : f32
    %17 = vector.broadcast %cst_10 : f32 to vector<8x128xf32>
    %18 = arith.addf %17, %16 : vector<8x128xf32>
    %19 = arith.mulf %9, %18 : vector<8x128xf32>
    %cst_11 = arith.constant -0.00999999977 : f32
    %20 = vector.broadcast %cst_11 : f32 to vector<8x128xf32>
    %21 = arith.cmpf ogt, %9, %20 : vector<8x128xf32>
    %22 = math.exp %9 : vector<8x128xf32>
    %cst_12 = arith.constant 1.000000e+00 : f32
    %23 = vector.broadcast %cst_12 : f32 to vector<8x128xf32>
    %24 = arith.subf %22, %23 : vector<8x128xf32>
    %25 = arith.select %21, %19, %24 : vector<8x128xi1>, vector<8x128xf32>
    %cst_13 = arith.constant 0.000000e+00 : f32
    %26 = vector.broadcast %cst_13 : f32 to vector<8x128xf32>
    %27 = arith.cmpf ogt, %7, %26 : vector<8x128xf32>
    %28 = arith.select %27, %7, %25 : vector<8x128xi1>, vector<8x128xf32>
    %c1 = arith.constant 1 : index
    %c0_14 = arith.constant 0 : index
    %c0_15 = arith.constant 0 : index
    %29 = vector.load %arg3[%c1, %c0_14, %c0_15] : memref<5x128x128xf32, #tpu.memory_space<vmem>>, vector<1x128x128xf32>
    %30 = vector.shape_cast %29 : vector<1x128x128xf32> to vector<128x128xf32>
    %cst_16 = arith.constant dense<0.000000e+00> : vector<8x128xf32>
    %31 = tpu.matmul %0, %30, %cst_16 {dimension_numbers = #tpu.dot_dimension_numbers<[1], [0], [0], [1], [0, 0, 1, 1], [], []>} : vector<8x128xf32>, vector<128x128xf32>, vector<8x128xf32> -> vector<8x128xf32>
    %32 = vector.broadcast %2 : vector<1x128xf32> to vector<8x128xf32>
    %33 = arith.addf %31, %32 : vector<8x128xf32>
    %cst_17 = arith.constant 0.000000e+00 : f32
    %34 = vector.broadcast %cst_17 : f32 to vector<8x128xf32>
    %35 = arith.minimumf %33, %34 : vector<8x128xf32>
    %cst_18 = arith.constant 5.000000e-01 : f32
    %36 = vector.broadcast %cst_18 : f32 to vector<8x128xf32>
    %37 = arith.mulf %36, %35 : vector<8x128xf32>
    %cst_19 = arith.constant 0.333333343 : f32
    %38 = vector.broadcast %cst_19 : f32 to vector<8x128xf32>
    %39 = arith.mulf %35, %38 : vector<8x128xf32>
    %cst_20 = arith.constant 1.000000e+00 : f32
    %40 = vector.broadcast %cst_20 : f32 to vector<8x128xf32>
    %41 = arith.addf %40, %39 : vector<8x128xf32>
    %42 = arith.mulf %37, %41 : vector<8x128xf32>
    %cst_21 = arith.constant 1.000000e+00 : f32
    %43 = vector.broadcast %cst_21 : f32 to vector<8x128xf32>
    %44 = arith.addf %43, %42 : vector<8x128xf32>
    %45 = arith.mulf %35, %44 : vector<8x128xf32>
    %cst_22 = arith.constant -0.00999999977 : f32
    %46 = vector.broadcast %cst_22 : f32 to vector<8x128xf32>
    %47 = arith.cmpf ogt, %35, %46 : vector<8x128xf32>
    %48 = math.exp %35 : vector<8x128xf32>
    %cst_23 = arith.constant 1.000000e+00 : f32
    %49 = vector.broadcast %cst_23 : f32 to vector<8x128xf32>
    %50 = arith.subf %48, %49 : vector<8x128xf32>
    %51 = arith.select %47, %45, %50 : vector<8x128xi1>, vector<8x128xf32>
    %cst_24 = arith.constant 0.000000e+00 : f32
    %52 = vector.broadcast %cst_24 : f32 to vector<8x128xf32>
    %53 = arith.cmpf ogt, %33, %52 : vector<8x128xf32>
    %54 = arith.select %53, %33, %51 : vector<8x128xi1>, vector<8x128xf32>
    %55 = arith.maximumf %28, %54 : vector<8x128xf32>
    %c2 = arith.constant 2 : index
    %c0_25 = arith.constant 0 : index
    %c0_26 = arith.constant 0 : index
    %56 = vector.load %arg3[%c2, %c0_25, %c0_26] : memref<5x128x128xf32, #tpu.memory_space<vmem>>, vector<1x128x128xf32>
    %57 = vector.shape_cast %56 : vector<1x128x128xf32> to vector<128x128xf32>
    %cst_27 = arith.constant dense<0.000000e+00> : vector<8x128xf32>
    %58 = tpu.matmul %55, %57, %cst_27 {dimension_numbers = #tpu.dot_dimension_numbers<[1], [0], [0], [1], [0, 0, 1, 1], [], []>} : vector<8x128xf32>, vector<128x128xf32>, vector<8x128xf32> -> vector<8x128xf32>
    %59 = vector.extract_strided_slice %1 {offsets = [1, 0], sizes = [1, 128], strides = [1, 1]} : vector<4x128xf32> to vector<1x128xf32>
    %60 = vector.broadcast %59 : vector<1x128xf32> to vector<8x128xf32>
    %61 = arith.addf %58, %60 : vector<8x128xf32>
    %cst_28 = arith.constant 0.000000e+00 : f32
    %62 = vector.broadcast %cst_28 : f32 to vector<8x128xf32>
    %63 = arith.minimumf %61, %62 : vector<8x128xf32>
    %cst_29 = arith.constant 5.000000e-01 : f32
    %64 = vector.broadcast %cst_29 : f32 to vector<8x128xf32>
    %65 = arith.mulf %64, %63 : vector<8x128xf32>
    %cst_30 = arith.constant 0.333333343 : f32
    %66 = vector.broadcast %cst_30 : f32 to vector<8x128xf32>
    %67 = arith.mulf %63, %66 : vector<8x128xf32>
    %cst_31 = arith.constant 1.000000e+00 : f32
    %68 = vector.broadcast %cst_31 : f32 to vector<8x128xf32>
    %69 = arith.addf %68, %67 : vector<8x128xf32>
    %70 = arith.mulf %65, %69 : vector<8x128xf32>
    %cst_32 = arith.constant 1.000000e+00 : f32
    %71 = vector.broadcast %cst_32 : f32 to vector<8x128xf32>
    %72 = arith.addf %71, %70 : vector<8x128xf32>
    %73 = arith.mulf %63, %72 : vector<8x128xf32>
    %cst_33 = arith.constant -0.00999999977 : f32
    %74 = vector.broadcast %cst_33 : f32 to vector<8x128xf32>
    %75 = arith.cmpf ogt, %63, %74 : vector<8x128xf32>
    %76 = math.exp %63 : vector<8x128xf32>
    %cst_34 = arith.constant 1.000000e+00 : f32
    %77 = vector.broadcast %cst_34 : f32 to vector<8x128xf32>
    %78 = arith.subf %76, %77 : vector<8x128xf32>
    %79 = arith.select %75, %73, %78 : vector<8x128xi1>, vector<8x128xf32>
    %cst_35 = arith.constant 0.000000e+00 : f32
    %80 = vector.broadcast %cst_35 : f32 to vector<8x128xf32>
    %81 = arith.cmpf ogt, %61, %80 : vector<8x128xf32>
    %82 = arith.select %81, %61, %79 : vector<8x128xi1>, vector<8x128xf32>
    %c3 = arith.constant 3 : index
    %c0_36 = arith.constant 0 : index
    %c0_37 = arith.constant 0 : index
    %83 = vector.load %arg3[%c3, %c0_36, %c0_37] : memref<5x128x128xf32, #tpu.memory_space<vmem>>, vector<1x128x128xf32>
    %84 = vector.shape_cast %83 : vector<1x128x128xf32> to vector<128x128xf32>
    %cst_38 = arith.constant dense<0.000000e+00> : vector<8x128xf32>
    %85 = tpu.matmul %82, %84, %cst_38 {dimension_numbers = #tpu.dot_dimension_numbers<[1], [0], [0], [1], [0, 0, 1, 1], [], []>} : vector<8x128xf32>, vector<128x128xf32>, vector<8x128xf32> -> vector<8x128xf32>
    %86 = vector.extract_strided_slice %1 {offsets = [2, 0], sizes = [1, 128], strides = [1, 1]} : vector<4x128xf32> to vector<1x128xf32>
    %87 = vector.broadcast %86 : vector<1x128xf32> to vector<8x128xf32>
    %88 = arith.addf %85, %87 : vector<8x128xf32>
    %cst_39 = arith.constant 0.000000e+00 : f32
    %89 = vector.broadcast %cst_39 : f32 to vector<8x128xf32>
    %90 = arith.minimumf %88, %89 : vector<8x128xf32>
    %cst_40 = arith.constant 5.000000e-01 : f32
    %91 = vector.broadcast %cst_40 : f32 to vector<8x128xf32>
    %92 = arith.mulf %91, %90 : vector<8x128xf32>
    %cst_41 = arith.constant 0.333333343 : f32
    %93 = vector.broadcast %cst_41 : f32 to vector<8x128xf32>
    %94 = arith.mulf %90, %93 : vector<8x128xf32>
    %cst_42 = arith.constant 1.000000e+00 : f32
    %95 = vector.broadcast %cst_42 : f32 to vector<8x128xf32>
    %96 = arith.addf %95, %94 : vector<8x128xf32>
    %97 = arith.mulf %92, %96 : vector<8x128xf32>
    %cst_43 = arith.constant 1.000000e+00 : f32
    %98 = vector.broadcast %cst_43 : f32 to vector<8x128xf32>
    %99 = arith.addf %98, %97 : vector<8x128xf32>
    %100 = arith.mulf %90, %99 : vector<8x128xf32>
    %cst_44 = arith.constant -0.00999999977 : f32
    %101 = vector.broadcast %cst_44 : f32 to vector<8x128xf32>
    %102 = arith.cmpf ogt, %90, %101 : vector<8x128xf32>
    %103 = math.exp %90 : vector<8x128xf32>
    %cst_45 = arith.constant 1.000000e+00 : f32
    %104 = vector.broadcast %cst_45 : f32 to vector<8x128xf32>
    %105 = arith.subf %103, %104 : vector<8x128xf32>
    %106 = arith.select %102, %100, %105 : vector<8x128xi1>, vector<8x128xf32>
    %cst_46 = arith.constant 0.000000e+00 : f32
    %107 = vector.broadcast %cst_46 : f32 to vector<8x128xf32>
    %108 = arith.cmpf ogt, %88, %107 : vector<8x128xf32>
    %109 = arith.select %108, %88, %106 : vector<8x128xi1>, vector<8x128xf32>
    %c4 = arith.constant 4 : index
    %c0_47 = arith.constant 0 : index
    %c0_48 = arith.constant 0 : index
    %110 = vector.load %arg3[%c4, %c0_47, %c0_48] : memref<5x128x128xf32, #tpu.memory_space<vmem>>, vector<1x128x128xf32>
    %111 = vector.shape_cast %110 : vector<1x128x128xf32> to vector<128x128xf32>
    %cst_49 = arith.constant dense<0.000000e+00> : vector<8x128xf32>
    %112 = tpu.matmul %109, %111, %cst_49 {dimension_numbers = #tpu.dot_dimension_numbers<[1], [0], [0], [1], [0, 0, 1, 1], [], []>} : vector<8x128xf32>, vector<128x128xf32>, vector<8x128xf32> -> vector<8x128xf32>
    %113 = vector.extract_strided_slice %1 {offsets = [3, 0], sizes = [1, 128], strides = [1, 1]} : vector<4x128xf32> to vector<1x128xf32>
    %114 = vector.broadcast %113 : vector<1x128xf32> to vector<8x128xf32>
    %115 = arith.addf %112, %114 : vector<8x128xf32>
    %c0_50 = arith.constant 0 : index
    %c0_51 = arith.constant 0 : index
    %116 = vector.load %arg4[%c0_50, %c0_51] : memref<8x128xf32, #tpu.memory_space<vmem>>, vector<8x128xf32>
    tpu.vector_store %arg4[%c0_50, %c0_51], %115 {strides = array<i32>} : memref<8x128xf32, #tpu.memory_space<vmem>>, vector<8x128xf32>,
    return
  }
  func.func @transform_0(%arg0: i32) -> (i32, i32) {
    %c0_i32 = arith.constant 0 : i32
    %c0_i32_0 = arith.constant 0 : i32
    return %arg0, %c0_i32 : i32, i32
  }
  func.func @transform_1(%arg0: i32) -> (i32, i32) {
    %c0_i32 = arith.constant 0 : i32
    %c0_i32_0 = arith.constant 0 : i32
    %c0_i32_1 = arith.constant 0 : i32
    return %c0_i32, %c0_i32_0 : i32, i32
  }
  func.func @transform_2(%arg0: i32) -> (i32, i32, i32) {
    %c0_i32 = arith.constant 0 : i32
    %c0_i32_0 = arith.constant 0 : i32
    %c0_i32_1 = arith.constant 0 : i32
    %c0_i32_2 = arith.constant 0 : i32
    return %c0_i32, %c0_i32_0, %c0_i32_1 : i32, i32, i32
  }
  func.func @transform_3(%arg0: i32) -> (i32, i32) {
    %c0_i32 = arith.constant 0 : i32
    %c0_i32_0 = arith.constant 0 : i32
    return %arg0, %c0_i32 : i32, i32
  }
}

</mosaic_0001>

<bundles_post_ra>
// kernel: tpu_custom_call.1
= control target key start
LH: loop header
LB: loop body
LE: loop exit
PB: predicated region body
PF: predicated region fallthrough
CT: control target
= control target key end

     0   :  { %8 = vsyncpa [#allocation3], 0  ;;  %s1212_s0 = inlined_call_operand.hbm [shape: f32[8,128], index: 0, kind: input, shape index: {}]   ;;  %s1213_s1 = inlined_call_operand.hbm [shape: f32[4,128], index: 1, kind: input, shape index: {}]   ;;  %s1214_s2 = inlined_call_operand.hbm [shape: f32[5,128,128], index: 2, kind: input, shape index: {}]   ;;  %s1215_s3 = inlined_call_operand.hbm [shape: f32[8,128], index: 3, kind: output, shape index: {}]  }
   0x1   :  { %9 = vsyncpa [#allocation6], 0 }
   0x2   :  { %10 = vsyncpa [#allocation4], 0  ;;  %s1073_s12 = smov [#allocation5]   ;;  %s1074_s14 = smov [#allocation2]  }
   0x3   :  { %s27_s13 = sshll.u32 %s1073_s12, 4  ;;  %s17_s15 = sshll.u32 %s1074_s14, 4  ;;  %s28_s13 = int_to_ptr.vmem [resolvable:$true] %s27_s13  ;;  %s18_s15 = int_to_ptr.vmem [resolvable:$true] %s17_s15 }
   0x4   :  { %s979_s18 = scalar_lea.hbm %s1213_s1, 64 }
   0x5   :  { %p980_p0 = scmp.ne.s32.totalorder %s1213_s1, %s979_s18  ;;  %p983_p1 = scmp.lt.u32.totalorder %s979_s18, %s1213_s1 }
   0x7   :  { %p985_p2 = pnand %p983_p1, %p980_p0 }
   0x9   :  { %988 = shalt.err (!%p985_p2)
}
   0xa   :  { %s989_s23 = scalar_lea.vmem %s28_s13, 64  ;;  %p994_p4 = scmp.lt.s32.totalorder %s28_s13, %s28_s13 }
   0xb   :  { %p990_p3 = scmp.ne.s32.totalorder %s28_s13, %s989_s23  ;;  %p995_p5 = scmp.lt.s32.totalorder %s989_s23, %s989_s23 }
   0xd   :  { %p996_p6 = por %p995_p5, %p994_p4 }
   0xf   :  { %p997_p7 = pnand %p996_p6, %p990_p3 }
  0x11   :  { %1000 = shalt.err (!%p997_p7)
}
  0x12   :  { %30 = dma.hbm_to_vmem [thread:$0]  %s1213_s1, 64, %s28_s13, [#allocation6]  }
  0x13   :  { %s1001_s28 = scalar_lea.hbm %s1212_s0, 128 }
  0x14   :  { %p1002_p8 = scmp.ne.s32.totalorder %s1212_s0, %s1001_s28  ;;  %p1005_p9 = scmp.lt.u32.totalorder %s1001_s28, %s1212_s0 }
  0x16   :  { %p1007_p10 = pnand %p1005_p9, %p1002_p8 }
  0x18   :  { %1010 = shalt.err (!%p1007_p10)
}
  0x19   :  { %s1011_s6 = scalar_lea.vmem %s18_s15, 128  ;;  %p1016_p12 = scmp.lt.s32.totalorder %s18_s15, %s18_s15 }
  0x1a   :  { %p1012_p11 = scmp.ne.s32.totalorder %s18_s15, %s1011_s6  ;;  %p1017_p13 = scmp.lt.s32.totalorder %s1011_s6, %s1011_s6 }
  0x1c   :  { %p1018_p0 = por %p1017_p13, %p1016_p12 }
  0x1e   :  { %p1019_p1 = pnand %p1018_p0, %p1012_p11 }
  0x20   :  { %1022 = shalt.err (!%p1019_p1)
}
  0x21   :  { %20 = dma.hbm_to_vmem [thread:$0]  %s1212_s0, 128, %s18_s15, [#allocation3]  }
  0x22   :  { %s1075_s8 = smov [#allocation7]   ;;  %s1023_s12 = scalar_lea.hbm %s1214_s2, 10240 }
  0x23   :  { %s36_s9 = sshll.u32 %s1075_s8, 4  ;;  %p1024_p2 = scmp.ne.s32.totalorder %s1214_s2, %s1023_s12  ;;  %s37_s9 = int_to_ptr.vmem [resolvable:$true] %s36_s9 }
  0x24   :  { %p1027_p3 = scmp.lt.u32.totalorder %s1023_s12, %s1214_s2 }
  0x26   :  { %p1029_p4 = pnand %p1027_p3, %p1024_p2 }
  0x28   :  { %1032 = shalt.err (!%p1029_p4)
}
  0x29   :  { %s1033_s18 = scalar_lea.vmem %s37_s9, 10240  ;;  %p1038_p6 = scmp.lt.s32.totalorder %s37_s9, %s37_s9 }
  0x2a   :  { %p1034_p5 = scmp.ne.s32.totalorder %s37_s9, %s1033_s18  ;;  %p1039_p7 = scmp.lt.s32.totalorder %s1033_s18, %s1033_s18 }
  0x2c   :  { %p1040_p8 = por %p1039_p7, %p1038_p6 }
  0x2e   :  { %p1041_p9 = pnand %p1040_p8, %p1034_p5 }
  0x30   :  { %1044 = shalt.err (!%p1041_p9)
}
  0x31   :  { %s1076_s0 = smov 128   ;;  %s1077_s15 = smov 8  }
  0x32   :  { %42 = dma.hbm_to_vmem [thread:$0]  %s1214_s2, 10240, %s37_s9, [#allocation6], %s1076_s0, %s1076_s0, %s1077_s15  }
  0x33   :  { %1067 = dma.done.wait [#allocation3], 128  }
  0x34   :  { %1068 = vsyncadd [#allocation3], 4294967168 }
  0x35   :  { %1069 = dma.done.wait [#allocation6], 10304  }
  0x36   :  { %1070 = vsyncadd [#allocation6], 4294956992  ;;  %v1078_v0 = vmov 0.0|0.0   ;;  %vm1079_vm0 = vmmov 0   ;;  %v1080_v1 = vmov 0.0   ;;  %v54_v2 = vld [vmem:[#allocation7] sm:$0xff] }
  0x37   :  { %842 = vmatprep.subr.bf16.mxu0 %v1078_v0  ;;  %866 = vmatprep.subr.bf16.mxu1 %v1078_v0  ;;  %v55_v3 = vld [vmem:[#allocation7 + $0x8] sm:$0xff]  ;;  %v159_v4 = vld [vmem:[#allocation7 + $0x80] sm:$0xff]  ;;  %v56_v7 = vld [vmem:[#allocation7 + $0x10] sm:$0xff]  ;;  %s1081_s2 = smov [#allocation8]  }
  0x38   :  { %699 = vmatprep.mubr.msk.f32.mxu0 %vm1079_vm0, %v1080_v1  ;;  %734 = vmatprep.mubr.msk.f32.mxu1 %vm1079_vm0, %v1080_v1  ;;  %v843_v5 = vpack.c.bf16 %v55_v3, %v54_v2  ;;  %v160_v6 = vld [vmem:[#allocation7 + $0x88] sm:$0xff]  ;;  %v57_v8 = vld [vmem:[#allocation7 + $0x18] sm:$0xff]  ;;  %v161_v10 = vld [vmem:[#allocation7 + $0x90] sm:$0xff]  ;;  %s568_s21 = sshll.u32 %s1081_s2, 4  ;;  %s569_s21 = int_to_ptr.vmem [resolvable:$true] %s568_s21 }
  0x39   :  { %v867_v9 = vpack.c.bf16 %v160_v6, %v159_v4  ;;  %v162_v11 = vld [vmem:[#allocation7 + $0x98] sm:$0xff]  ;;  %v846_v12 = vpack.c.bf16 %v57_v8, %v56_v7  ;;  %v58_v14 = vld [vmem:[#allocation7 + $0x20] sm:$0xff]  ;;  %v59_v15 = vld [vmem:[#allocation7 + $0x28] sm:$0xff]  ;;  %s1045_s22 = scalar_lea.vmem %s569_s21, 128  ;;  %p1050_p11 = scmp.lt.s32.totalorder %s569_s21, %s569_s21 }
  0x3a   :  { %844 = vmatpush3.bf16.msra.mxu0 %v843_v5  ;;  %v870_v13 = vpack.c.bf16 %v162_v11, %v161_v10  ;;  %v163_v16 = vld [vmem:[#allocation7 + $0xa0] sm:$0xff]  ;;  %v164_v17 = vld [vmem:[#allocation7 + $0xa8] sm:$0xff]  ;;  %v849_v18 = vpack.c.bf16 %v59_v15, %v58_v14  ;;  %v60_v20 = vld [vmem:[#allocation7 + $0x30] sm:$0xff]  ;;  %p1046_p10 = scmp.ne.s32.totalorder %s569_s21, %s1045_s22  ;;  %p1051_p12 = scmp.lt.s32.totalorder %s1045_s22, %s1045_s22 }
  0x3b   :  { %868 = vmatpush3.bf16.msra.mxu1 %v867_v9  ;;  %845 = vmatprep.subr.bf16.mxu0 %v1078_v0  ;;  %v873_v19 = vpack.c.bf16 %v164_v17, %v163_v16  ;;  %v61_v21 = vld [vmem:[#allocation7 + $0x38] sm:$0xff]  ;;  %v165_v22 = vld [vmem:[#allocation7 + $0xb0] sm:$0xff]  ;;  %v62_v26 = vld [vmem:[#allocation7 + $0x40] sm:$0xff] }
  0x3c   :  { %869 = vmatprep.subr.bf16.mxu1 %v1078_v0  ;;  %v166_v23 = vld [vmem:[#allocation7 + $0xb8] sm:$0xff]  ;;  %v852_v24 = vpack.c.bf16 %v61_v21, %v60_v20  ;;  %v63_v27 = vld [vmem:[#allocation7 + $0x48] sm:$0xff]  ;;  %v167_v28 = vld [vmem:[#allocation7 + $0xc0] sm:$0xff]  ;;  %p1052_p13 = por %p1051_p12, %p1050_p11 }
  0x3d   :  { %v876_v25 = vpack.c.bf16 %v166_v23, %v165_v22  ;;  %v168_v29 = vld [vmem:[#allocation7 + $0xc8] sm:$0xff]  ;;  %v855_v30 = vpack.c.bf16 %v63_v27, %v62_v26  ;;  %v64_v32 = vld [vmem:[#allocation7 + $0x50] sm:$0xff]  ;;  %v65_v33 = vld [vmem:[#allocation7 + $0x58] sm:$0xff]  ;;  %v70_v22 = vlaneseq }
  0x3e   :  { %847 = vmatpush3.bf16.msra.mxu0 %v846_v12  ;;  %v879_v31 = vpack.c.bf16 %v168_v29, %v167_v28  ;;  %v169_v34 = vld [vmem:[#allocation7 + $0xd0] sm:$0xff]  ;;  %v170_v35 = vld [vmem:[#allocation7 + $0xd8] sm:$0xff]  ;;  %v858_v36 = vpack.c.bf16 %v65_v33, %v64_v32  ;;  %v66_v38 = vld [vmem:[#allocation7 + $0x60] sm:$0xff]  ;;  %p1053_p0 = pnand %p1052_p13, %p1046_p10 }
  0x3f   :  { %871 = vmatpush3.bf16.msra.mxu1 %v870_v13  ;;  %848 = vmatprep.subr.bf16.mxu0 %v1078_v0  ;;  %v882_v37 = vpack.c.bf16 %v170_v35, %v169_v34  ;;  %v67_v39 = vld [vmem:[#allocation7 + $0x68] sm:$0xff]  ;;  %v171_v40 = vld [vmem:[#allocation7 + $0xe0] sm:$0xff]  ;;  %v68_v44 = vld [vmem:[#allocation7 + $0x70] sm:$0xff]  ;;  %v1175_v23 = vshrl.u32 %v70_v22, 7 }
  0x40   :  { %872 = vmatprep.subr.bf16.mxu1 %v1078_v0  ;;  %v172_v41 = vld [vmem:[#allocation7 + $0xe8] sm:$0xff]  ;;  %v861_v42 = vpack.c.bf16 %v67_v39, %v66_v38  ;;  %v69_v45 = vld [vmem:[#allocation7 + $0x78] sm:$0xff]  ;;  %v173_v46 = vld [vmem:[#allocation7 + $0xf0] sm:$0xff] }
  0x41   :  { %v885_v43 = vpack.c.bf16 %v172_v41, %v171_v40  ;;  %v174_v47 = vld [vmem:[#allocation7 + $0xf8] sm:$0xff]  ;;  %v864_v48 = vpack.c.bf16 %v69_v45, %v68_v44  ;;  %v261_v50 = vld [vmem:[#allocation7 + $0x100] sm:$0xff]  ;;  %v262_v51 = vld [vmem:[#allocation7 + $0x108] sm:$0xff] }
  0x42   :  { %850 = vmatpush3.bf16.msra.mxu0 %v849_v18  ;;  %v888_v49 = vpack.c.bf16 %v174_v47, %v173_v46  ;;  %v52_v52 = vld [vmem:[#allocation2] sm:$0xff]  ;;  %v891_v53 = vpack.c.bf16 %v262_v51, %v261_v50  ;;  %v265_v57 = vld [vmem:[#allocation7 + $0x120] sm:$0xff]  ;;  %v266_v58 = vld [vmem:[#allocation7 + $0x128] sm:$0xff] }
  0x43   :  { %874 = vmatpush3.bf16.msra.mxu1 %v873_v19  ;;  %851 = vmatprep.subr.bf16.mxu0 %v1078_v0  ;;  %v263_v54 = vld [vmem:[#allocation7 + $0x110] sm:$0xff]  ;;  %v264_v55 = vld [vmem:[#allocation7 + $0x118] sm:$0xff]  ;;  %v897_v59 = vpack.c.bf16 %v266_v58, %v265_v57  ;;  %v269_v63 = vld [vmem:[#allocation7 + $0x140] sm:$0xff] }
  0x44   :  { %875 = vmatprep.subr.bf16.mxu1 %v1078_v0  ;;  %v894_v56 = vpack.c.bf16 %v264_v55, %v263_v54  ;;  %v267_v60 = vld [vmem:[#allocation7 + $0x130] sm:$0xff]  ;;  %v268_v61 = vld [vmem:[#allocation7 + $0x138] sm:$0xff]  ;;  %v270_v2 = vld [vmem:[#allocation7 + $0x148] sm:$0xff] }
  0x45   :  { %v900_v62 = vpack.c.bf16 %v268_v61, %v267_v60  ;;  %v903_v3 = vpack.c.bf16 %v270_v2, %v269_v63  ;;  %v271_v4 = vld [vmem:[#allocation7 + $0x150] sm:$0xff]  ;;  %v272_v5 = vld [vmem:[#allocation7 + $0x158] sm:$0xff]  ;;  %v273_v7 = vld [vmem:[#allocation7 + $0x160] sm:$0xff] }
  0x46   :  { %853 = vmatpush3.bf16.msra.mxu0 %v852_v24  ;;  %v906_v6 = vpack.c.bf16 %v272_v5, %v271_v4  ;;  %v274_v8 = vld [vmem:[#allocation7 + $0x168] sm:$0xff]  ;;  %v275_v10 = vld [vmem:[#allocation7 + $0x170] sm:$0xff]  ;;  %v276_v11 = vld [vmem:[#allocation7 + $0x178] sm:$0xff]  ;;  %v72_v24 = vsub.s32 0, %v1175_v23 }
  0x47   :  { %877 = vmatpush3.bf16.msra.mxu1 %v876_v25  ;;  %854 = vmatprep.subr.bf16.mxu0 %v1078_v0  ;;  %v909_v9 = vpack.c.bf16 %v274_v8, %v273_v7  ;;  %v912_v12 = vpack.c.bf16 %v276_v11, %v275_v10  ;;  %v366_v13 = vld [vmem:[#allocation7 + $0x180] sm:$0xff]  ;;  %v367_v14 = vld [vmem:[#allocation7 + $0x188] sm:$0xff]  ;;  %v368_v15 = vld [vmem:[#allocation7 + $0x190] sm:$0xff] }
  0x48   :  { %878 = vmatprep.subr.bf16.mxu1 %v1078_v0  ;;  %v915_v16 = vpack.c.bf16 %v367_v14, %v366_v13  ;;  %v369_v17 = vld [vmem:[#allocation7 + $0x198] sm:$0xff]  ;;  %v370_v19 = vld [vmem:[#allocation7 + $0x1a0] sm:$0xff]  ;;  %v371_v20 = vld [vmem:[#allocation7 + $0x1a8] sm:$0xff] }
  0x49   :  { %v918_v18 = vpack.c.bf16 %v369_v17, %v368_v15  ;;  %v921_v21 = vpack.c.bf16 %v371_v20, %v370_v19  ;;  %v1178_v25 = vld [vmem:[#allocation5] sm:$0xf]  ;;  %v372_v58 = vld [vmem:[#allocation7 + $0x1b0] sm:$0xff]  ;;  %v374_v61 = vld [vmem:[#allocation7 + $0x1c0] sm:$0xff]  ;;  %v279_v19 = vsub.s32 1, %v1175_v23 }
  0x4a   :  { %856 = vmatpush3.bf16.msra.mxu0 %v855_v30  ;;  %v73_v26 = vrot.slane %v1178_v25, %v72_v24  ;;  %v376_v2 = vld [vmem:[#allocation7 + $0x1d0] sm:$0xff]  ;;  %v378_v5 = vld [vmem:[#allocation7 + $0x1e0] sm:$0xff]  ;;  %v381_v8 = vld [vmem:[#allocation7 + $0x1f8] sm:$0xff] }
  0x4b   :  { %880 = vmatpush3.bf16.msra.mxu1 %v879_v31  ;;  %857 = vmatprep.subr.bf16.mxu0 %v1078_v0  ;;  %v471_v10 = vld [vmem:[#allocation7 + $0x200] sm:$0xff]  ;;  %v472_v11 = vld [vmem:[#allocation7 + $0x208] sm:$0xff]  ;;  %v474_v14 = vld [vmem:[#allocation7 + $0x218] sm:$0xff]  ;;  %v280_v20 = vrot.slane %v1178_v25, %v279_v19 }
  0x4c   :  { %881 = vmatprep.subr.bf16.mxu1 %v1078_v0  ;;  %v939_v13 = vpack.c.bf16 %v472_v11, %v471_v10  ;;  %v476_v17 = vld [vmem:[#allocation7 + $0x228] sm:$0xff] }
  0x4e   :  { %859 = vmatpush3.bf16.msra.mxu0 %v858_v36 }
  0x4f   :  { %883 = vmatpush3.bf16.msra.mxu1 %v882_v37  ;;  %860 = vmatprep.subr.bf16.mxu0 %v1078_v0 }
  0x50   :  { %884 = vmatprep.subr.bf16.mxu1 %v1078_v0 }
  0x52   :  { %862 = vmatpush3.bf16.msra.mxu0 %v861_v42 }
  0x53   :  { %886 = vmatpush3.bf16.msra.mxu1 %v885_v43  ;;  %863 = vmatprep.subr.bf16.mxu0 %v1078_v0 }
  0x54   :  { %887 = vmatprep.subr.bf16.mxu1 %v1078_v0 }
  0x56   :  { %865 = vmatpush3.bf16.msra.mxu0 %v864_v48 }
  0x57   :  { %889 = vmatpush3.bf16.msra.mxu1 %v888_v49  ;;  %890 = vmatprep.subr.bf16.mxu0 %v1078_v0 }
  0x58   :  { %914 = vmatprep.subr.bf16.mxu1 %v1078_v0 }
  0x59   :  { %700 = vmatmul.mubr.f32.vlgmr.msra.gmra.mrb[0].mxu0 %v52_v52 }
  0x5a   :  { %735 = vmatmul.mubr.f32.vlgmr.msra.gmra.mrb[0].mxu1 %v52_v52  ;;  %892 = vmatpush3.bf16.msra.mxu0 %v891_v53 }
  0x5b   :  { %893 = vmatprep.subr.bf16.mxu0 %v1078_v0  ;;  %769 = vmatprep.mubr.msk.f32.mxu0 %vm1079_vm0, %v1080_v1 }
  0x5c   :  { %804 = vmatprep.mubr.msk.f32.mxu1 %vm1079_vm0, %v1080_v1  ;;  %916 = vmatpush3.bf16.msra.mxu1 %v915_v16  ;;  %v475_v16 = vld [vmem:[#allocation7 + $0x220] sm:$0xff] }
  0x5d   :  { %917 = vmatprep.subr.bf16.mxu1 %v1078_v0 }
  0x5e   :  { %895 = vmatpush3.bf16.msra.mxu0 %v894_v56 }
  0x5f   :  { %896 = vmatprep.subr.bf16.mxu0 %v1078_v0 }
  0x60   :  { %919 = vmatpush3.bf16.msra.mxu1 %v918_v18  ;;  %v945_v18 = vpack.c.bf16 %v476_v17, %v475_v16 }
  0x61   :  { %920 = vmatprep.subr.bf16.mxu1 %v1078_v0 }
  0x62   :  { %898 = vmatpush3.bf16.msra.mxu0 %v897_v59  ;;  %v373_v59 = vld [vmem:[#allocation7 + $0x1b8] sm:$0xff] }
  0x63   :  { %899 = vmatprep.subr.bf16.mxu0 %v1078_v0  ;;  %v924_v60 = vpack.c.bf16 %v373_v59, %v372_v58 }
  0x64   :  { %922 = vmatpush3.bf16.msra.mxu1 %v921_v21 }
  0x65   :  { %923 = vmatprep.subr.bf16.mxu1 %v1078_v0 }
  0x66   :  { %901 = vmatpush3.bf16.msra.mxu0 %v900_v62  ;;  %v375_v62 = vld [vmem:[#allocation7 + $0x1c8] sm:$0xff] }
  0x67   :  { %902 = vmatprep.subr.bf16.mxu0 %v1078_v0  ;;  %v927_v63 = vpack.c.bf16 %v375_v62, %v374_v61 }
  0x68   :  { %925 = vmatpush3.bf16.msra.mxu1 %v924_v60 }
  0x69   :  { %926 = vmatprep.subr.bf16.mxu1 %v1078_v0 }
  0x6a   :  { %904 = vmatpush3.bf16.msra.mxu0 %v903_v3  ;;  %v377_v3 = vld [vmem:[#allocation7 + $0x1d8] sm:$0xff] }
  0x6b   :  { %905 = vmatprep.subr.bf16.mxu0 %v1078_v0  ;;  %v930_v4 = vpack.c.bf16 %v377_v3, %v376_v2 }
  0x6c   :  { %928 = vmatpush3.bf16.msra.mxu1 %v927_v63 }
  0x6d   :  { %929 = vmatprep.subr.bf16.mxu1 %v1078_v0 }
  0x6e   :  { %907 = vmatpush3.bf16.msra.mxu0 %v906_v6  ;;  %v379_v6 = vld [vmem:[#allocation7 + $0x1e8] sm:$0xff] }
  0x6f   :  { %908 = vmatprep.subr.bf16.mxu0 %v1078_v0  ;;  %v933_v7 = vpack.c.bf16 %v379_v6, %v378_v5 }
  0x70   :  { %931 = vmatpush3.bf16.msra.mxu1 %v930_v4 }
  0x71   :  { %932 = vmatprep.subr.bf16.mxu1 %v1078_v0 }
  0x72   :  { %910 = vmatpush3.bf16.msra.mxu0 %v909_v9 }
  0x73   :  { %911 = vmatprep.subr.bf16.mxu0 %v1078_v0 }
  0x74   :  { %934 = vmatpush3.bf16.msra.mxu1 %v933_v7  ;;  %v489_v7 = vsub.s32 3, %v1175_v23 }
  0x75   :  { %935 = vmatprep.subr.bf16.mxu1 %v1078_v0 }
  0x76   :  { %913 = vmatpush3.bf16.msra.mxu0 %v912_v12  ;;  %v473_v12 = vld [vmem:[#allocation7 + $0x210] sm:$0xff] }
  0x77   :  { %938 = vmatprep.subr.bf16.mxu0 %v1078_v0  ;;  %v942_v15 = vpack.c.bf16 %v474_v14, %v473_v12 }
 0x12c   :  { %v140_v27 = vpop.f32.mrb[0].mxu0 }
 0x12d   :  { %v141_v28 = vadd.f32 %v140_v27, %v73_v26  ;;  %v241_v29 = vpop.f32.mrb[0].mxu1  ;;  %v701_v30 = vpop.f32.mrb[1].mxu0 }
 0x12e   :  { %v242_v31 = vadd.f32 %v241_v29, %v73_v26  ;;  %v736_v32 = vpop.f32.mrb[1].mxu1 }
 0x12f   :  { %v144_v33 = vmin.f32 %v141_v28, 0.0  ;;  %vm156_vm2 = vcmp.gt.f32.partialorder %v141_v28, 0.0 }
 0x130   :  { %v245_v34 = vmin.f32 %v242_v31, 0.0  ;;  %vm257_vm4 = vcmp.gt.f32.partialorder %v242_v31, 0.0 }
 0x131   :  { %v146_v35 = vmul.f32 0.33333334, %v144_v33  ;;  %v152_v36 = vmul.f32 1.442695, %v144_v33  ;;  %v145_v41 = vmul.f32 0.5, %v144_v33 }
 0x132   :  { %v247_v37 = vmul.f32 0.33333334, %v245_v34  ;;  %v253_v39 = vmul.f32 1.442695, %v245_v34  ;;  %v246_v42 = vmul.f32 0.5, %v245_v34 }
 0x133   :  { %v147_v38 = vadd.f32 1.0, %v146_v35  ;;  %971 = vpow2.f32 %v152_v36  ;;  %vm151_vm1 = vcmp.gt.f32.partialorder %v144_v33, -0.01  ;;  %vm252_vm3 = vcmp.gt.f32.partialorder %v245_v34, -0.01 }
 0x134   :  { %v248_v40 = vadd.f32 1.0, %v247_v37  ;;  %973 = vpow2.f32 %v253_v39  ;;  %v478_v39 = vld [vmem:[#allocation7 + $0x238] sm:$0xff] }
 0x135   :  { %v148_v43 = vmul.f32 %v147_v38, %v145_v41  ;;  %v477_v38 = vld [vmem:[#allocation7 + $0x230] sm:$0xff]  ;;  %v479_v41 = vld [vmem:[#allocation7 + $0x240] sm:$0xff] }
 0x136   :  { %v249_v44 = vmul.f32 %v248_v40, %v246_v42  ;;  %v948_v40 = vpack.c.bf16 %v478_v39, %v477_v38  ;;  %v480_v42 = vld [vmem:[#allocation7 + $0x248] sm:$0xff] }
 0x137   :  { %v149_v45 = vadd.f32 1.0, %v148_v43  ;;  %v951_v43 = vpack.c.bf16 %v480_v42, %v479_v41 }
 0x138   :  { %v250_v46 = vadd.f32 1.0, %v249_v44  ;;  %v481_v44 = vld [vmem:[#allocation7 + $0x250] sm:$0xff] }
 0x139   :  { %v150_v49 = vmul.f32 %v149_v45, %v144_v33  ;;  %v482_v45 = vld [vmem:[#allocation7 + $0x258] sm:$0xff] }
 0x13a   :  { %v251_v51 = vmul.f32 %v250_v46, %v245_v34  ;;  %v954_v46 = vpack.c.bf16 %v482_v45, %v481_v44 }
 0x13d   :  { %v972_v47 = vpop.eup %971 }
 0x13e   :  { %v974_v48 = vpop.eup %973  ;;  %v578_v50 = vadd.f32 -1.0, %v972_v47  ;;  %v483_v47 = vld [vmem:[#allocation7 + $0x260] sm:$0xff] }
 0x13f   :  { %v579_v52 = vadd.f32 -1.0, %v974_v48  ;;  %v484_v48 = vld [vmem:[#allocation7 + $0x268] sm:$0xff] }
 0x140   :  { %v155_v53 = vsel %vm151_vm1, %v150_v49, %v578_v50  ;;  %v957_v49 = vpack.c.bf16 %v484_v48, %v483_v47  ;;  %v485_v50 = vld [vmem:[#allocation7 + $0x270] sm:$0xff] }
 0x141   :  { %v157_v54 = vsel %vm156_vm2, %v141_v28, %v155_v53  ;;  %v256_v55 = vsel %vm252_vm3, %v251_v51, %v579_v52  ;;  %v486_v51 = vld [vmem:[#allocation7 + $0x278] sm:$0xff]  ;;  %v384_v53 = vsub.s32 2, %v1175_v23 }
 0x142   :  { %v258_v56 = vsel %vm257_vm4, %v242_v31, %v256_v55  ;;  %v960_v52 = vpack.c.bf16 %v486_v51, %v485_v50 }
 0x143   :  { %v259_v57 = vmax.f32 %v157_v54, %v258_v56  ;;  %v385_v54 = vrot.slane %v1178_v25, %v384_v53 }
 0x145   :  { %770 = vmatmul.mubr.f32.vlgmr.msra.gmra.mrb[2].mxu0 %v259_v57 }
 0x146   :  { %839 = vmatprep.mubr.msk.f32.mxu0 %vm1079_vm0, %v1080_v1  ;;  %v380_v1 = vld [vmem:[#allocation7 + $0x1f0] sm:$0xff]  ;;  %940 = vmatpush3.bf16.msra.mxu0 %v939_v13 }
 0x147   :  { %v936_v9 = vpack.c.bf16 %v381_v8, %v380_v1  ;;  %941 = vmatprep.subr.bf16.mxu0 %v1078_v0  ;;  %v490_v1 = vrot.slane %v1178_v25, %v489_v7 }
 0x149   :  { %937 = vmatpush3.bf16.msra.mxu1 %v936_v9 }
 0x14a   :  { %943 = vmatpush3.bf16.msra.mxu0 %v942_v15 }
 0x14b   :  { %944 = vmatprep.subr.bf16.mxu0 %v1078_v0 }
 0x14e   :  { %946 = vmatpush3.bf16.msra.mxu0 %v945_v18 }
 0x14f   :  { %947 = vmatprep.subr.bf16.mxu0 %v1078_v0 }
 0x152   :  { %949 = vmatpush3.bf16.msra.mxu0 %v948_v40 }
 0x153   :  { %950 = vmatprep.subr.bf16.mxu0 %v1078_v0 }
 0x156   :  { %952 = vmatpush3.bf16.msra.mxu0 %v951_v43 }
 0x157   :  { %953 = vmatprep.subr.bf16.mxu0 %v1078_v0 }
 0x15a   :  { %955 = vmatpush3.bf16.msra.mxu0 %v954_v46 }
 0x15b   :  { %956 = vmatprep.subr.bf16.mxu0 %v1078_v0 }
 0x15e   :  { %958 = vmatpush3.bf16.msra.mxu0 %v957_v49 }
 0x15f   :  { %959 = vmatprep.subr.bf16.mxu0 %v1078_v0 }
 0x162   :  { %961 = vmatpush3.bf16.msra.mxu0 %v960_v52 }
 0x218   :  { %v347_v21 = vpop.f32.mrb[2].mxu0 }
 0x219   :  { %v348_v22 = vadd.f32 %v347_v21, %v280_v20  ;;  %v771_v24 = vpop.f32.mrb[3].mxu0 }
 0x21b   :  { %v351_v26 = vmin.f32 %v348_v22, 0.0  ;;  %vm363_vm6 = vcmp.gt.f32.partialorder %v348_v22, 0.0 }
 0x21d   :  { %v353_v27 = vmul.f32 0.33333334, %v351_v26  ;;  %v359_v28 = vmul.f32 1.442695, %v351_v26  ;;  %v352_v30 = vmul.f32 0.5, %v351_v26 }
 0x21e   :  { %vm358_vm5 = vcmp.gt.f32.partialorder %v351_v26, -0.01 }
 0x21f   :  { %v354_v29 = vadd.f32 1.0, %v353_v27  ;;  %975 = vpow2.f32 %v359_v28 }
 0x221   :  { %v355_v31 = vmul.f32 %v354_v29, %v352_v30 }
 0x223   :  { %v356_v32 = vadd.f32 1.0, %v355_v31 }
 0x225   :  { %v357_v34 = vmul.f32 %v356_v32, %v351_v26 }
 0x229   :  { %v976_v33 = vpop.eup %975 }
 0x22a   :  { %v580_v35 = vadd.f32 -1.0, %v976_v33 }
 0x22c   :  { %v362_v36 = vsel %vm358_vm5, %v357_v34, %v580_v35 }
 0x22d   :  { %v364_v37 = vsel %vm363_vm6, %v348_v22, %v362_v36 }
 0x22e   :  { %805 = vmatmul.mubr.f32.vlgmr.msra.gmra.mrb[2].mxu1 %v364_v37 }
 0x301   :  { %v452_v55 = vpop.f32.mrb[2].mxu1 }
 0x302   :  { %v453_v56 = vadd.f32 %v452_v55, %v385_v54  ;;  %v806_v57 = vpop.f32.mrb[3].mxu1 }
 0x304   :  { %v456_v58 = vmin.f32 %v453_v56, 0.0  ;;  %vm468_vm8 = vcmp.gt.f32.partialorder %v453_v56, 0.0 }
 0x306   :  { %v458_v59 = vmul.f32 0.33333334, %v456_v58  ;;  %v464_v60 = vmul.f32 1.442695, %v456_v58  ;;  %v457_v62 = vmul.f32 0.5, %v456_v58 }
 0x307   :  { %vm463_vm7 = vcmp.gt.f32.partialorder %v456_v58, -0.01 }
 0x308   :  { %v459_v61 = vadd.f32 1.0, %v458_v59  ;;  %977 = vpow2.f32 %v464_v60 }
 0x30a   :  { %v460_v63 = vmul.f32 %v459_v61, %v457_v62 }
 0x30c   :  { %v461_v2 = vadd.f32 1.0, %v460_v63 }
 0x30e   :  { %v462_v4 = vmul.f32 %v461_v2, %v456_v58 }
 0x312   :  { %v978_v3 = vpop.eup %977 }
 0x313   :  { %v581_v5 = vadd.f32 -1.0, %v978_v3 }
 0x315   :  { %v467_v0 = vsel %vm463_vm7, %v462_v4, %v581_v5 }
 0x316   :  { %v469_v6 = vsel %vm468_vm8, %v453_v56, %v467_v0 }
 0x317   :  { %840 = vmatmul.mubr.f32.vlgmr.msra.gmra.mrb[4].mxu0 %v469_v6 }
 0x3ea   :  { %v557_v8 = vpop.f32.mrb[4].mxu0 }
 0x3eb   :  { %v558_v9 = vadd.f32 %v557_v8, %v490_v1  ;;  %v841_v10 = vpop.f32.mrb[5].mxu0 }
 0x3ed   :  { %561 = vst [vmem:[#allocation8] sm:$0xff] %v558_v9 }
 0x3ee   :  { %1056 = shalt.err (!%p1053_p0)
}
 0x3ef   :  { %s1057_s25 = scalar_lea.hbm %s1215_s3, 128 }
 0x3f0   :  { %p1058_p1 = scmp.ne.s32.totalorder %s1215_s3, %s1057_s25  ;;  %p1061_p2 = scmp.lt.u32.totalorder %s1057_s25, %s1215_s3 }
 0x3f2   :  { %p1063_p3 = pnand %p1061_p2, %p1058_p1 }
 0x3f4   :  { %1066 = shalt.err (!%p1063_p3)
}
 0x3f5   :  { %571 = dma.vmem_to_hbm [thread:$0]  %s569_s21, 128, %s1215_s3, [#allocation4]  }
 0x3f6   :  { %1071 = dma.done.wait [#allocation4], 128  }
 0x3f7   :  { %1072 = vsyncadd [#allocation4], 4294967168 }
 0x3f8   :  { %575 = vsyncpa [#allocation3], 1 }
 0x3f9   :  { %576 = vsyncpa [#allocation6], 1 }
 0x3fa   :  { %577 = vsyncpa [#allocation4], 1 }

</bundles_post_ra>
